<compile_context>
chip_gen: v5e
topology: v5e:2x2
jax: 0.10.0
libtpu: 0.0.40
codegen_flags: <defaults>
</compile_context>

<pallas_src>
import functools

import jax
import jax.numpy as jnp
from jax.experimental import pallas as pl
from jax.experimental.pallas import tpu as pltpu


def _decision_kernel(x_ref, w_ref, b_ref, o_ref, *, activation: str):
    # One MXU pass per batch tile; the full input_size reduction fits a single
    # VMEM block so no K accumulator is needed.
    # TODO(synk): if input_size ever exceeds a single VMEM block, add a K grid
    # axis (last), a VMEM f32 accumulator, and pl.when init/finalize.
    logits = jnp.dot(x_ref[...], w_ref[...], preferred_element_type=jnp.float32)
    logits = logits + b_ref[...].astype(jnp.float32)  # (TB, N) + (1, N)

    if activation == "sigmoid":
        # Single EUP tanh; avoids the exp(-x) inf intermediate.
        out = 0.5 * (jnp.tanh(0.5 * logits) + 1.0)
    elif activation == "softmax":
        m = jnp.max(logits, axis=1, keepdims=True)
        e = jnp.exp(logits - m)
        out = e / jnp.sum(e, axis=1, keepdims=True)  # exact normalization
    else:  # 'linear'
        out = logits

    o_ref[...] = out.astype(o_ref.dtype)


def _round_up(v: int, m: int) -> int:
    return ((v + m - 1) // m) * m


_VMEM_LIMIT_BYTES = 48 * 1024 * 1024          # fits v7x's 64 MiB physical VMEM
_TILE_VMEM_BUDGET = int(0.6 * _VMEM_LIMIT_BYTES)
_MAX_TB = 4096


def _choose_tb(B: int, K: int, n_out: int, itemsize: int) -> int:
    """Adaptive batch tile: big enough to amortize ~0.35us/step, small enough
    to fit the VMEM budget, and split >=2 ways for v7x megacore when B > 8."""
    if B <= 8:
        return B  # single full-batch tile (block dim == array dim is legal)
    per_row = 2 * (K + n_out) * itemsize          # double-buffered x + out rows
    fixed = 2 * (K * n_out + n_out) * itemsize    # resident (double-buffered) w + b
    avail = max(_TILE_VMEM_BUDGET - fixed, per_row * 8)
    tb = min(_MAX_TB, max(8, (avail // per_row) // 8 * 8))
    # v7x: keep >= 2 grid steps so ("parallel",) can shard batch across the
    # two TensorCores (one extra ~0.35us step on v5e/v6e is negligible).
    tb = min(tb, _round_up(pl.cdiv(B, 2), 8))
    return tb


def decision_layer(x, w, b, activation="sigmoid"):
    """x: (B, input_size), w: (input_size, n_class), b: (n_class,)."""
    B, K = x.shape
    n_class = w.shape[1]
    itemsize = jnp.dtype(x.dtype).itemsize

    tb = _choose_tb(B, K, n_class, itemsize)
    grid = (pl.cdiv(B, tb),)

    b2d = b.reshape(1, n_class)

    kernel = functools.partial(_decision_kernel, activation=activation)

    cost = pl.CostEstimate(
        flops=2 * B * K * n_class,
        transcendentals=B * n_class,
        bytes_accessed=(B * K + K * n_class + n_class) * itemsize + B * n_class * 4,
    )

    # NOTE: w/b index_maps are constant; Pallas only re-DMAs them when the
    # block index changes, so a Buffered(1) override is unnecessary at this K.
    return pl.pallas_call(
        kernel,
        out_shape=jax.ShapeDtypeStruct((B, n_class), jnp.float32),
        grid=grid,
        in_specs=[
            pl.BlockSpec((tb, K), lambda i: (i, 0)),       # x: tiled over batch
            pl.BlockSpec((K, n_class), lambda i: (0, 0)),  # w: fully resident
            pl.BlockSpec((1, n_class), lambda i: (0, 0)),  # b: fully resident
        ],
        out_specs=pl.BlockSpec((tb, n_class), lambda i: (i, 0)),
        compiler_params=pltpu.CompilerParams(
            dimension_semantics=("parallel",),   # shards batch across v7x's 2 TCs
            vmem_limit_bytes=_VMEM_LIMIT_BYTES,
        ),
        cost_estimate=cost,
    )(x, w, b2d)


if __name__ == "__main__":
    # DecisionLayer(input_size=32, n_class=4, activation='sigmoid')
    B, input_size, n_class = 8, 32, 4

    key = jax.random.PRNGKey(0)
    kx, kw, kb, kx2 = jax.random.split(key, 4)

    # Deterministic parameter init (mimics nn.Linear uniform(-1/sqrt(in), 1/sqrt(in)))
    bound = 1.0 / jnp.sqrt(jnp.float32(input_size))
    w_torch_layout = jax.random.uniform(
        kw, (n_class, input_size), jnp.float32, minval=-bound, maxval=bound
    )
    bias = jax.random.uniform(kb, (n_class,), jnp.float32, minval=-bound, maxval=bound)
    w = w_torch_layout.T  # (input_size, n_class) so kernel does x @ w

    x = jax.random.normal(kx, (B, input_size), jnp.float32)

    # sigmoid branch
    out = jax.block_until_ready(decision_layer(x, w, bias, activation="sigmoid"))
    ref = jax.nn.sigmoid(x @ w_torch_layout.T + bias)
    assert out.shape == (B, n_class)
    assert jnp.allclose(out, ref, atol=1e-5, rtol=1e-5)

    # softmax(dim=1) branch (exact normalization now)
    out_sm = jax.block_until_ready(decision_layer(x, w, bias, activation="softmax"))
    ref_sm = jax.nn.softmax(x @ w_torch_layout.T + bias, axis=1)
    assert out_sm.shape == (B, n_class)
    assert jnp.allclose(out_sm, ref_sm, atol=1e-4, rtol=1e-4)

    # Ragged batch (B not a multiple of the tile) exercises the cdiv-grid path
    # that replaced the wrapper-side batch padding.
    B_ragged = 13
    x2 = jax.random.normal(kx2, (B_ragged, input_size), jnp.float32)
    out_r = jax.block_until_ready(decision_layer(x2, w, bias, activation="softmax"))
    ref_r = jax.nn.softmax(x2 @ w_torch_layout.T + bias, axis=1)
    assert out_r.shape == (B_ragged, n_class)
    assert jnp.allclose(out_r, ref_r, atol=1e-4, rtol=1e-4)

    print("KERNEL_OK")
</pallas_src>

<mosaic_0001>
module attributes {stable_mosaic.version = 11 : i64} {
  func.func @_decision_kernel(%arg0: i32, %arg1: memref<8x32xf32, #tpu.memory_space<vmem>>, %arg2: memref<32x4xf32, #tpu.memory_space<vmem>>, %arg3: memref<1x4xf32, #tpu.memory_space<vmem>>, %arg4: memref<8x4xf32, #tpu.memory_space<vmem>>) attributes {dimension_semantics = [#tpu.dimension_semantics<parallel>], iteration_bounds = array<i64: 1>, scalar_prefetch = 0 : i64, scratch_operands = 0 : i64, tpu.core_type = #tpu.core_type<tc>, window_params = [{transform_indices = @transform_0, window_bounds = array<i64: 8, 32>}, {pipeline_mode = #tpu.pipeline_mode<synchronous>, transform_indices = @transform_1, window_bounds = array<i64: 32, 4>}, {pipeline_mode = #tpu.pipeline_mode<synchronous>, transform_indices = @transform_2, window_bounds = array<i64: 1, 4>}, {transform_indices = @transform_3, window_bounds = array<i64: 8, 4>}]} {
    %c0 = arith.constant 0 : index
    %c0_0 = arith.constant 0 : index
    %0 = vector.load %arg1[%c0, %c0_0] : memref<8x32xf32, #tpu.memory_space<vmem>>, vector<8x32xf32>
    %c0_1 = arith.constant 0 : index
    %c0_2 = arith.constant 0 : index
    %1 = vector.load %arg2[%c0_1, %c0_2] : memref<32x4xf32, #tpu.memory_space<vmem>>, vector<32x4xf32>
    %cst = arith.constant dense<0.000000e+00> : vector<8x4xf32>
    %2 = tpu.matmul %0, %1, %cst {dimension_numbers = #tpu.dot_dimension_numbers<[1], [0], [0], [1], [0, 0, 1, 1], [], []>} : vector<8x32xf32>, vector<32x4xf32>, vector<8x4xf32> -> vector<8x4xf32>
    %c0_3 = arith.constant 0 : index
    %c0_4 = arith.constant 0 : index
    %3 = vector.load %arg3[%c0_3, %c0_4] : memref<1x4xf32, #tpu.memory_space<vmem>>, vector<1x4xf32>
    %4 = vector.broadcast %3 : vector<1x4xf32> to vector<8x4xf32>
    %5 = arith.addf %2, %4 : vector<8x4xf32>
    %cst_5 = arith.constant 5.000000e-01 : f32
    %6 = vector.broadcast %cst_5 : f32 to vector<8x4xf32>
    %7 = arith.mulf %6, %5 : vector<8x4xf32>
    %8 = math.tanh %7 : vector<8x4xf32>
    %cst_6 = arith.constant 1.000000e+00 : f32
    %9 = vector.broadcast %cst_6 : f32 to vector<8x4xf32>
    %10 = arith.addf %8, %9 : vector<8x4xf32>
    %cst_7 = arith.constant 5.000000e-01 : f32
    %11 = vector.broadcast %cst_7 : f32 to vector<8x4xf32>
    %12 = arith.mulf %11, %10 : vector<8x4xf32>
    %c0_8 = arith.constant 0 : index
    %c0_9 = arith.constant 0 : index
    %13 = vector.load %arg4[%c0_8, %c0_9] : memref<8x4xf32, #tpu.memory_space<vmem>>, vector<8x4xf32>
    tpu.vector_store %arg4[%c0_8, %c0_9], %12 {strides = array<i32>} : memref<8x4xf32, #tpu.memory_space<vmem>>, vector<8x4xf32>,
    return
  }
  func.func @transform_0(%arg0: i32) -> (i32, i32) {
    %c0_i32 = arith.constant 0 : i32
    %c0_i32_0 = arith.constant 0 : i32
    return %arg0, %c0_i32 : i32, i32
  }
  func.func @transform_1(%arg0: i32) -> (i32, i32) {
    %c0_i32 = arith.constant 0 : i32
    %c0_i32_0 = arith.constant 0 : i32
    %c0_i32_1 = arith.constant 0 : i32
    return %c0_i32, %c0_i32_0 : i32, i32
  }
  func.func @transform_2(%arg0: i32) -> (i32, i32) {
    %c0_i32 = arith.constant 0 : i32
    %c0_i32_0 = arith.constant 0 : i32
    %c0_i32_1 = arith.constant 0 : i32
    return %c0_i32, %c0_i32_0 : i32, i32
  }
  func.func @transform_3(%arg0: i32) -> (i32, i32) {
    %c0_i32 = arith.constant 0 : i32
    %c0_i32_0 = arith.constant 0 : i32
    return %arg0, %c0_i32 : i32, i32
  }
}

</mosaic_0001>

<bundles_post_ra>
// kernel: tpu_custom_call.1
= control target key start
LH: loop header
LB: loop body
LE: loop exit
PB: predicated region body
PF: predicated region fallthrough
CT: control target
= control target key end

     0   :  { %vm23_vm0 = vcmask 261120   ;;  %vm51_vm1 = vcmask 31744   ;;  %s102_s1 = inlined_call_operand.vmem [shape: f32[32,4], index: 1, kind: input, shape index: {}]   ;;  %s103_s2 = inlined_call_operand.vmem [shape: f32[1,4], index: 2, kind: input, shape index: {}]   ;;  %s104_s0 = inlined_call_operand.vmem [shape: f32[8,32], index: 0, kind: input, shape index: {}]   ;;  %s105_s3 = inlined_call_operand.vmem [shape: f32[8,4], index: 3, kind: output, shape index: {}]  }
   0x1   :  { %v18_v0 = vld [vmem:[%s102_s1 + $0x18] sm:$0xff]  ;;  %v17_v1 = vld [vmem:[%s102_s1 + $0x10] sm:$0xff]  ;;  %v16_v2 = vld [vmem:[%s102_s1 + $0x8] sm:$0xff] }
   0x2   :  { %39 = vmatpush.msra.mxu0 %v18_v0  ;;  %v15_v3 = vld [vmem:[%s102_s1] sm:$0xff] }
   0x3   :  { %v14_v4 = vld [vmem:[%s104_s0] sm:$0xff] }
   0x4   :  { %40 = vmatpush.msra.mxu0 %v17_v1  ;;  %v58_v5 = vld [vmem:[%s103_s2] ss:$0 sm:$0xff] }
   0x6   :  { %41 = vmatpush.msra.mxu0 %v16_v2 }
   0x8   :  { %42 = vmatpush.msra.mxu0 %v15_v3 }
   0x9   :  { %57 = vmatmul.msk.f32.vlgmr.msra.gmra.mxu0 %vm23_vm0, %v14_v4 }
  0x86   :  { %v44_v6 = vpop.f32.mrf.mxu0 }
  0x87   :  { %v45_v7 = vadd.f32 %v58_v5, %v44_v6 }
  0x89   :  { %v47_v8 = vmul.f32 0.5, %v45_v7 }
  0x8b   :  { %59 = vtanh.f32 %v47_v8 }
  0x91   :  { %v60_v9 = vpop.eup %59 }
  0x92   :  { %v49_v10 = vadd.f32 1.0, %v60_v9 }
  0x94   :  { %v50_v11 = vmul.f32 0.5, %v49_v10 }
  0x96   :  { %52 = vst.msk [vmem:[%s105_s3] sm:$0xff] %vm51_vm1, %v50_v11 }

</bundles_post_ra>
